<compile_context>
chip_gen: v7x
topology: tpu7x:2x2x1
jax: 0.10.0
libtpu: 0.0.40
codegen_flags: <defaults>
</compile_context>

<pallas_src>
import functools

import jax
import jax.numpy as jnp
import numpy as np
from jax.experimental import pallas as pl
from jax.experimental.pallas import tpu as pltpu


def _choose_hw_tile(hw, d, m_chunk, feat_itemsize, budget_bytes, max_hw_tile=None):
    """VMEM-budgeted HW tile.

    Returns (THW, T, mask_tail). Keeps
      2*D*THW*feat_bytes   (feat double-buffer)
    + THW*M*feat_bytes     (materialized one-hot temp feeding the MXU)
    + D*M*4                (pred accumulator)
    + double-buffered target/ind/mask
    under `budget_bytes`. THW is a multiple of 128 unless it covers all of HW.
    """
    fixed = d * m_chunk * 4 + 2 * (d * m_chunk * 4 + 2 * m_chunk * 4)
    per_col = 2 * d * feat_itemsize + m_chunk * feat_itemsize
    avail = max(budget_bytes - fixed, 128 * per_col)
    thw = max(128, (avail // per_col) // 128 * 128)
    if max_hw_tile is not None:
        thw = min(thw, max(128, (max_hw_tile // 128) * 128))
    if thw >= hw:
        return hw, 1, False                       # untiled: full-HW block
    t = -(-hw // thw)
    return thw, t, (hw % thw != 0)


def _reg_loss_kernel(feat_ref, ind_ref, mask_ref, tgt_ref,
                     loss_ref, num_ref, pred_acc, *, hw_total, mask_tail):
    t = pl.program_id(2)            # grid = (B, M-split, HW-tile); HW innermost
    n_t = pl.num_programs(2)

    @pl.when(t == 0)
    def _init():
        pred_acc[...] = jnp.zeros_like(pred_acc)

    feat = feat_ref[0]                              # (D, THW)  f32 or bf16
    idx = ind_ref[0]                                # (1, M)    int32
    thw = feat.shape[1]
    m = idx.shape[1]

    if mask_tail:
        # Last tile may extend past HW: zero the OOB tail so garbage/NaN in the
        # padded block can't poison the matmul (NaN * 0 == NaN).
        col = jax.lax.broadcasted_iota(jnp.int32, (1, thw), 1)
        valid = hw_total - t * thw
        feat = jnp.where(col < valid, feat, jnp.zeros_like(feat))

    # One-hot gather for this HW tile. The tile offset is hoisted onto the
    # (1, M) index vector (cheap) instead of the (THW, M) iota (full-tile add).
    idx_local = idx - t * thw                                       # (1, M)
    h_iota = jax.lax.broadcasted_iota(jnp.int32, (thw, m), 0)       # (THW, M)
    onehot = (h_iota == idx_local).astype(feat.dtype)               # (THW, M)
    # Exact gather: weights are 0/1 with at most one nonzero per column and the
    # accumulation is f32, so bf16 feat stays bit-exact.
    pred_acc[...] += jnp.dot(feat, onehot,
                             preferred_element_type=jnp.float32)    # (D, M)

    @pl.when(t == n_t - 1)
    def _finalize():
        msk = mask_ref[0]                           # (1, M), broadcasts over D
        diff = (pred_acc[...] - tgt_ref[0]) * msk   # (D, M) lane-dense, f32
        adiff = jnp.abs(diff)
        sl1 = jnp.where(adiff < 1.0, 0.5 * diff * diff, adiff - 0.5)
        loss_ref[...] = jnp.sum(sl1).reshape(1, 1, 1)
        num_ref[...] = jnp.sum(msk).reshape(1, 1, 1)


def reg_loss(output, mask, ind, target, *,
             vmem_budget_bytes=10 << 20, max_hw_tile=None):
    """output: (B, D, H, W) NCHW; mask: (B, M); ind: (B, M); target: (B, M, D)."""
    B, D, H, W = output.shape
    M = ind.shape[1]
    HW = H * W

    # Keep bf16 features bf16 (halves feat HBM traffic and one-hot VMEM temp,
    # native bf16 MXU path); everything else runs in f32.
    feat_dtype = jnp.bfloat16 if output.dtype == jnp.bfloat16 else jnp.float32
    feat = output.reshape(B, D, HW).astype(feat_dtype)   # free view of NCHW

    # Split M across a second *parallel* grid axis when the batch is too small
    # to keep both v7x TensorCores busy (no effect on single-TC v5e/v6e).
    MS = 2 if B == 1 else 1

    # Pad M so every M chunk is a multiple of 128 (lane-dense one-hot, matmul
    # output and smooth-L1 path). Padded entries have ind=0, mask=0, target=0
    # and contribute exactly 0 to both loss and num.
    m_quant = 128 * MS
    M_pad = -(-M // m_quant) * m_quant
    MT = M_pad // MS
    pad_m = M_pad - M

    ind_p = jnp.pad(ind.astype(jnp.int32), ((0, 0), (0, pad_m)))
    mask_p = jnp.pad(mask.astype(jnp.float32), ((0, 0), (0, pad_m)))
    tgt_p = jnp.pad(target.astype(jnp.float32), ((0, 0), (0, pad_m), (0, 0)))

    ind3 = ind_p.reshape(B, 1, M_pad)                      # lane-dense
    mask3 = mask_p.reshape(B, 1, M_pad)                    # lane-dense
    tgt_t = jnp.transpose(tgt_p, (0, 2, 1))                # (B, D, M_pad), tiny

    THW, T, mask_tail = _choose_hw_tile(
        HW, D, MT, jnp.dtype(feat_dtype).itemsize, vmem_budget_bytes, max_hw_tile)

    kernel = functools.partial(_reg_loss_kernel, hw_total=HW, mask_tail=mask_tail)

    loss_b, num_b = pl.pallas_call(
        kernel,
        out_shape=(jax.ShapeDtypeStruct((B * MS, 1, 1), jnp.float32),
                   jax.ShapeDtypeStruct((B * MS, 1, 1), jnp.float32)),
        grid_spec=pltpu.PrefetchScalarGridSpec(
            num_scalar_prefetch=0,
            grid=(B, MS, T),
            in_specs=[
                pl.BlockSpec((1, D, THW), lambda b, s, t: (b, 0, t)),   # feat
                pl.BlockSpec((1, 1, MT), lambda b, s, t: (b, 0, s)),    # ind
                pl.BlockSpec((1, 1, MT), lambda b, s, t: (b, 0, s)),    # mask
                pl.BlockSpec((1, D, MT), lambda b, s, t: (b, 0, s)),    # target^T
            ],
            out_specs=[
                pl.BlockSpec((1, 1, 1), lambda b, s, t: (b * MS + s, 0, 0)),
                pl.BlockSpec((1, 1, 1), lambda b, s, t: (b * MS + s, 0, 0)),
            ],
            scratch_shapes=[pltpu.VMEM((D, MT), jnp.float32)],          # pred acc
        ),
        compiler_params=pltpu.CompilerParams(
            dimension_semantics=("parallel", "parallel", "arbitrary"),
            vmem_limit_bytes=32 << 20),   # explicit: within physical on v5e/v6e/v7x
    )(feat, ind3, mask3, tgt_t)

    return jnp.sum(loss_b) / (jnp.sum(num_b) + 0.0001)


def reg_loss_reference(output, mask, ind, target):
    """Pure-JAX reference mirroring the PyTorch forward."""
    B, D, H, W = output.shape
    M = ind.shape[1]
    feat = jnp.transpose(output, (0, 2, 3, 1)).reshape(B, H * W, D)
    gather_idx = jnp.broadcast_to(ind[:, :, None].astype(jnp.int32), (B, M, D))
    pred = jnp.take_along_axis(feat, gather_idx, axis=1)
    num = jnp.sum(mask.astype(jnp.float32))
    m = mask.astype(jnp.float32)[:, :, None]
    diff = (pred * m - target * m).astype(jnp.float32)
    adiff = jnp.abs(diff)
    sl1 = jnp.where(adiff < 1.0, 0.5 * diff * diff, adiff - 0.5)
    return jnp.sum(sl1) / (num + 0.0001)


if __name__ == "__main__":
    key = jax.random.PRNGKey(0)

    def make_case(k, B, D, H, W, M, dtype):
        k1, k2, k3, k4 = jax.random.split(k, 4)
        output = jax.random.normal(k1, (B, D, H, W), dtype=jnp.float32).astype(dtype)
        ind = jax.random.randint(k2, (B, M), 0, H * W, dtype=jnp.int32)
        mask = (jax.random.uniform(k3, (B, M)) > 0.3).astype(jnp.float32)
        target = jax.random.normal(k4, (B, M, D), dtype=jnp.float32)
        return output, mask, ind, target

    cases = [
        # (shapes, feat dtype, forced max HW tile, tolerance)
        (dict(B=2, D=4, H=16, W=16, M=8), jnp.float32, None, 1e-5),   # default path
        # B=1 exercises the v7x M-split parallel axis; forced THW=128 exercises
        # HW tiling with a zero-masked non-divisor tail tile (HW=400).
        (dict(B=1, D=2, H=20, W=20, M=12), jnp.float32, 128, 1e-5),
        # bf16 feature path (bf16 one-hot, exact f32-accumulated gather).
        (dict(B=2, D=3, H=16, W=16, M=8), jnp.bfloat16, None, 1e-4),
    ]

    for i, (shp, dtype, max_tile, tol) in enumerate(cases):
        key, sub = jax.random.split(key)
        output, mask, ind, target = make_case(sub, dtype=dtype, **shp)
        loss = jax.block_until_ready(
            reg_loss(output, mask, ind, target, max_hw_tile=max_tile))
        ref = jax.block_until_ready(reg_loss_reference(output, mask, ind, target))
        assert np.allclose(np.asarray(loss), np.asarray(ref), rtol=tol, atol=tol), (
            f"case {i} mismatch: pallas={loss} ref={ref}")

    print("KERNEL_OK")
</pallas_src>

<mosaic_0001>
module attributes {stable_mosaic.version = 11 : i64} {
  func.func @_reg_loss_kernel(%arg0: i32, %arg1: i32, %arg2: i32, %arg3: memref<1x4x256xf32, #tpu.memory_space<vmem>>, %arg4: memref<1x1x128xi32, #tpu.memory_space<vmem>>, %arg5: memref<1x1x128xf32, #tpu.memory_space<vmem>>, %arg6: memref<1x4x128xf32, #tpu.memory_space<vmem>>, %arg7: memref<1x1x1xf32, #tpu.memory_space<vmem>>, %arg8: memref<1x1x1xf32, #tpu.memory_space<vmem>>, %arg9: memref<4x128xf32, #tpu.memory_space<vmem>>) attributes {dimension_semantics = [#tpu.dimension_semantics<parallel>, #tpu.dimension_semantics<parallel>, #tpu.dimension_semantics<arbitrary>], iteration_bounds = array<i64: 2, 1, 1>, scalar_prefetch = 0 : i64, scratch_operands = 1 : i64, tpu.core_type = #tpu.core_type<tc>, window_params = [{transform_indices = @transform_0, window_bounds = array<i64: 1, 4, 256>}, {transform_indices = @transform_1, window_bounds = array<i64: 1, 1, 128>}, {transform_indices = @transform_2, window_bounds = array<i64: 1, 1, 128>}, {transform_indices = @transform_3, window_bounds = array<i64: 1, 4, 128>}, {transform_indices = @transform_4, window_bounds = array<i64: 1, 1, 1>}, {transform_indices = @transform_5, window_bounds = array<i64: 1, 1, 1>}]} {
    %c0_i32 = arith.constant 0 : i32
    %0 = arith.cmpi eq, %arg2, %c0_i32 : i32
    %1 = arith.extui %0 : i1 to i32
    %c0_i32_0 = arith.constant 0 : i32
    %2 = arith.cmpi ne, %1, %c0_i32_0 : i32
    scf.if %2 {
      %cst_12 = arith.constant 0.000000e+00 : f32
      %22 = vector.broadcast %cst_12 : f32 to vector<4x128xf32>
      %c0_13 = arith.constant 0 : index
      %c0_14 = arith.constant 0 : index
      %23 = vector.load %arg9[%c0_13, %c0_14] : memref<4x128xf32, #tpu.memory_space<vmem>>, vector<4x128xf32>
      tpu.vector_store %arg9[%c0_13, %c0_14], %22 {strides = array<i32>} : memref<4x128xf32, #tpu.memory_space<vmem>>, vector<4x128xf32>,
    } else {
    }
    %c0 = arith.constant 0 : index
    %c0_1 = arith.constant 0 : index
    %c0_2 = arith.constant 0 : index
    %3 = vector.load %arg3[%c0, %c0_1, %c0_2] : memref<1x4x256xf32, #tpu.memory_space<vmem>>, vector<1x4x256xf32>
    %4 = vector.shape_cast %3 : vector<1x4x256xf32> to vector<4x256xf32>
    %c0_3 = arith.constant 0 : index
    %c0_4 = arith.constant 0 : index
    %c0_5 = arith.constant 0 : index
    %5 = vector.load %arg4[%c0_3, %c0_4, %c0_5] : memref<1x1x128xi32, #tpu.memory_space<vmem>>, vector<1x1x128xi32>
    %6 = vector.shape_cast %5 : vector<1x1x128xi32> to vector<1x128xi32>
    %c256_i32 = arith.constant 256 : i32
    %7 = arith.muli %arg2, %c256_i32 : i32
    %8 = vector.broadcast %7 : i32 to vector<1x128xi32>
    %9 = arith.subi %6, %8 : vector<1x128xi32>
    %10 = tpu.iota {dimensions = array<i32: 0>} : vector<256x128xi32>
    %11 = vector.broadcast %9 : vector<1x128xi32> to vector<256x128xi32>
    %12 = arith.cmpi eq, %10, %11 : vector<256x128xi32>
    %13 = arith.extui %12 : vector<256x128xi1> to vector<256x128xi32>
    %14 = arith.sitofp %13 : vector<256x128xi32> to vector<256x128xf32>
    %c0_6 = arith.constant 0 : index
    %c0_7 = arith.constant 0 : index
    %15 = vector.load %arg9[%c0_6, %c0_7] : memref<4x128xf32, #tpu.memory_space<vmem>>, vector<4x128xf32>
    %cst = arith.constant dense<0.000000e+00> : vector<4x128xf32>
    %16 = tpu.matmul %4, %14, %cst {dimension_numbers = #tpu.dot_dimension_numbers<[1], [0], [0], [1], [0, 0, 1, 1], [], []>} : vector<4x256xf32>, vector<256x128xf32>, vector<4x128xf32> -> vector<4x128xf32>
    %17 = arith.addf %15, %16 : vector<4x128xf32>
    %c0_8 = arith.constant 0 : index
    %c0_9 = arith.constant 0 : index
    %18 = vector.load %arg9[%c0_8, %c0_9] : memref<4x128xf32, #tpu.memory_space<vmem>>, vector<4x128xf32>
    tpu.vector_store %arg9[%c0_8, %c0_9], %17 {strides = array<i32>} : memref<4x128xf32, #tpu.memory_space<vmem>>, vector<4x128xf32>,
    %c0_i32_10 = arith.constant 0 : i32
    %19 = arith.cmpi eq, %arg2, %c0_i32_10 : i32
    %20 = arith.extui %19 : i1 to i32
    %c0_i32_11 = arith.constant 0 : i32
    %21 = arith.cmpi ne, %20, %c0_i32_11 : i32
    scf.if %21 {
      %c0_12 = arith.constant 0 : index
      %c0_13 = arith.constant 0 : index
      %c0_14 = arith.constant 0 : index
      %22 = vector.load %arg5[%c0_12, %c0_13, %c0_14] : memref<1x1x128xf32, #tpu.memory_space<vmem>>, vector<1x1x128xf32>
      %23 = vector.shape_cast %22 : vector<1x1x128xf32> to vector<1x128xf32>
      %c0_15 = arith.constant 0 : index
      %c0_16 = arith.constant 0 : index
      %24 = vector.load %arg9[%c0_15, %c0_16] : memref<4x128xf32, #tpu.memory_space<vmem>>, vector<4x128xf32>
      %c0_17 = arith.constant 0 : index
      %c0_18 = arith.constant 0 : index
      %c0_19 = arith.constant 0 : index
      %25 = vector.load %arg6[%c0_17, %c0_18, %c0_19] : memref<1x4x128xf32, #tpu.memory_space<vmem>>, vector<1x4x128xf32>
      %26 = vector.shape_cast %25 : vector<1x4x128xf32> to vector<4x128xf32>
      %27 = arith.subf %24, %26 : vector<4x128xf32>
      %28 = vector.broadcast %23 : vector<1x128xf32> to vector<4x128xf32>
      %29 = arith.mulf %27, %28 : vector<4x128xf32>
      %30 = math.absf %29 : vector<4x128xf32>
      %cst_20 = arith.constant 1.000000e+00 : f32
      %31 = vector.broadcast %cst_20 : f32 to vector<4x128xf32>
      %32 = arith.cmpf olt, %30, %31 : vector<4x128xf32>
      %cst_21 = arith.constant 5.000000e-01 : f32
      %33 = vector.broadcast %cst_21 : f32 to vector<4x128xf32>
      %34 = arith.mulf %33, %29 : vector<4x128xf32>
      %35 = arith.mulf %34, %29 : vector<4x128xf32>
      %cst_22 = arith.constant 5.000000e-01 : f32
      %36 = vector.broadcast %cst_22 : f32 to vector<4x128xf32>
      %37 = arith.subf %30, %36 : vector<4x128xf32>
      %38 = arith.select %32, %35, %37 : vector<4x128xi1>, vector<4x128xf32>
      %39 = vector.shape_cast %38 : vector<4x128xf32> to vector<1x4x128xf32>
      %cst_23 = arith.constant dense<0.000000e+00> : vector<1xf32>
      %40 = vector.multi_reduction <add>, %39, %cst_23 [1, 2] : vector<1x4x128xf32> to vector<1xf32>
      %41 = vector.shape_cast %40 : vector<1xf32> to vector<1x1x1xf32>
      %42 = vector.extract %41[0, 0, 0] : f32 from vector<1x1x1xf32>
      %43 = vector.broadcast %42 : f32 to vector<1x1x1xf32>
      %c0_24 = arith.constant 0 : index
      %c0_25 = arith.constant 0 : index
      %c0_26 = arith.constant 0 : index
      %44 = vector.load %arg7[%c0_24, %c0_25, %c0_26] : memref<1x1x1xf32, #tpu.memory_space<vmem>>, vector<1x1x1xf32>
      tpu.vector_store %arg7[%c0_24, %c0_25, %c0_26], %43 {strides = array<i32>} : memref<1x1x1xf32, #tpu.memory_space<vmem>>, vector<1x1x1xf32>,
      %45 = vector.shape_cast %23 : vector<1x128xf32> to vector<1x1x128xf32>
      %cst_27 = arith.constant dense<0.000000e+00> : vector<1xf32>
      %46 = vector.multi_reduction <add>, %45, %cst_27 [1, 2] : vector<1x1x128xf32> to vector<1xf32>
      %47 = vector.shape_cast %46 : vector<1xf32> to vector<1x1x1xf32>
      %48 = vector.extract %47[0, 0, 0] : f32 from vector<1x1x1xf32>
      %49 = vector.broadcast %48 : f32 to vector<1x1x1xf32>
      %c0_28 = arith.constant 0 : index
      %c0_29 = arith.constant 0 : index
      %c0_30 = arith.constant 0 : index
      %50 = vector.load %arg8[%c0_28, %c0_29, %c0_30] : memref<1x1x1xf32, #tpu.memory_space<vmem>>, vector<1x1x1xf32>
      tpu.vector_store %arg8[%c0_28, %c0_29, %c0_30], %49 {strides = array<i32>} : memref<1x1x1xf32, #tpu.memory_space<vmem>>, vector<1x1x1xf32>,
    } else {
    }
    return
  }
  func.func @transform_0(%arg0: i32, %arg1: i32, %arg2: i32) -> (i32, i32, i32) {
    %c0_i32 = arith.constant 0 : i32
    %c0_i32_0 = arith.constant 0 : i32
    return %arg0, %c0_i32, %arg2 : i32, i32, i32
  }
  func.func @transform_1(%arg0: i32, %arg1: i32, %arg2: i32) -> (i32, i32, i32) {
    %c0_i32 = arith.constant 0 : i32
    %c0_i32_0 = arith.constant 0 : i32
    return %arg0, %c0_i32, %arg1 : i32, i32, i32
  }
  func.func @transform_2(%arg0: i32, %arg1: i32, %arg2: i32) -> (i32, i32, i32) {
    %c0_i32 = arith.constant 0 : i32
    %c0_i32_0 = arith.constant 0 : i32
    return %arg0, %c0_i32, %arg1 : i32, i32, i32
  }
  func.func @transform_3(%arg0: i32, %arg1: i32, %arg2: i32) -> (i32, i32, i32) {
    %c0_i32 = arith.constant 0 : i32
    %c0_i32_0 = arith.constant 0 : i32
    return %arg0, %c0_i32, %arg1 : i32, i32, i32
  }
  func.func @transform_4(%arg0: i32, %arg1: i32, %arg2: i32) -> (i32, i32, i32) {
    %c1_i32 = arith.constant 1 : i32
    %0 = arith.muli %arg0, %c1_i32 : i32
    %1 = arith.addi %0, %arg1 : i32
    %c0_i32 = arith.constant 0 : i32
    %c0_i32_0 = arith.constant 0 : i32
    %c0_i32_1 = arith.constant 0 : i32
    return %1, %c0_i32, %c0_i32_0 : i32, i32, i32
  }
  func.func @transform_5(%arg0: i32, %arg1: i32, %arg2: i32) -> (i32, i32, i32) {
    %c1_i32 = arith.constant 1 : i32
    %0 = arith.muli %arg0, %c1_i32 : i32
    %1 = arith.addi %0, %arg1 : i32
    %c0_i32 = arith.constant 0 : i32
    %c0_i32_0 = arith.constant 0 : i32
    %c0_i32_1 = arith.constant 0 : i32
    return %1, %c0_i32, %c0_i32_0 : i32, i32, i32
  }
}

</mosaic_0001>

<bundles_post_ra>
// kernel: tpu_custom_call.1
= control target key start
LH: loop header
LB: loop body
LE: loop exit
PB: predicated region body
PF: predicated region fallthrough
CT: control target
= control target key end

     0   :  { %11 = vsyncpa [#allocation4], 0  ;;  %s1431_s0 = inlined_call_operand.hbm [shape: f32[2,4,256], index: 0, kind: input, shape index: {}]   ;;  %s1432_s1 = inlined_call_operand.vmem [shape: s32[2,1,128], index: 1, kind: input, shape index: {}]   ;;  %s1433_s2 = inlined_call_operand.hbm [shape: f32[2,1,128], index: 2, kind: input, shape index: {}]   ;;  %s1434_s3 = inlined_call_operand.vmem [shape: f32[2,4,128], index: 3, kind: input, shape index: {}]   ;;  %s1435_s4 = inlined_call_operand.vmem [shape: f32[2,1,1], index: 4, kind: output, shape index: {0}]   ;;  %s1436_s5 = inlined_call_operand.vmem [shape: f32[2,1,1], index: 5, kind: output, shape index: {1}]  }
   0x1   :  { %13 = vsyncpa [#allocation4 + $0x1], 0 }
   0x2   :  { %14 = vsyncpa [#allocation6], 0 }
   0x3   :  { %16 = vsyncpa [#allocation6 + $0x1], 0  ;;  %s1154_s18 = smov 0   ;;  %s1156_s19 = smov 0  }
   0x4   :  { %s1158_s20 = smov 0   ;;  %s1160_s21 = smov 0  }
   0x5   :  { %s1162_s22 = smov 0   ;;  %s1164_s23 = smov 0  }
   0x6 LB: > { %s790_s24 = sadd.s32 4294967295, %s1118_s23   ;;  %s41_s25 = sadd.s32 1, %s1114_s22  ;;  %s1118_s23 = sphi %s1164_s23, %s22_s23   ;;  %s1114_s22 = sphi %s1162_s22, %s1450_s22   ;;  %s1110_s21 = sphi %s1160_s21, %s1449_s21   ;;  %s1106_s20 = sphi %s1158_s20, %s1448_s20   ;;  %s1102_s19 = sphi %s1156_s19, %s1447_s19   ;;  %s1098_s18 = sphi %s1154_s18, %s1446_s18  }
   0x7   : > { %p43_p0 = scmp.ge.s32.totalorder %s41_s25, 2  ;;  %s50_s26 = sadd.s32 1, %s1106_s20 }
   0x8   : > { %p57_p1 = scmp.ne.s32.totalorder %s1106_s20, %s1102_s19  ;;  %p58_p2 = scmp.eq.s32.totalorder %s1118_s23, 0 }
   0x9   : > { %s1452_s25 = smov (%p43_p0, %s41_s25), 0  ;;  %p63_p4 = scmp.ne.s32.totalorder %s1102_s19, %s1098_s18 }
   0xa   : > { %p1190_p3 = por %p58_p2, %p57_p1  ;;  %s45_s28 = ssub.s32 %s1114_s22, %s1452_s25 }
   0xb   : > { %p64_p5 = scmp.eq.s32.totalorder %s790_s24, 0  ;;  %p48_p6 = scmp.eq.s32.totalorder %s45_s28, 0 }
   0xc   : > { %p952_p8 = scmp.lt.s32.totalorder %s1118_s23, 2  ;;  %s1206_s6 = sand.u32 1, %s1106_s20  }
   0xd   : > { %p1197_p7 = por %p64_p5, %p63_p4  ;;  %s869_s7 = sshll.u32 %s1114_s22, 7 }
   0xe   : > { %s1203_s30 = scalar_select %p48_p6, %s1106_s20, %s50_s26  }
   0xf   : > { %s1439_s29 = scalar_select %p1197_p7, 1, 0 }
  0x10   : > { %s794_s8 = sshll.u32 %s1206_s6, 3  ;;  %s1213_s11 = scalar_lea.hbm %s1431_s0, %s869_s7 }
  0x11   : > { %s231_s12 = scalar_lea.vmem [#allocation3], %s794_s8  ;;  %p1217_p9 = pnand %p952_p8, %p1190_p3 }
  0x12   : > { %s241_s13 = sshll.u32 %s231_s12, 4  ;;  %s228_s15 = scalar_lea.sflag [#allocation4], %s1206_s6  ;;  %s1221_s13 = int_to_ptr.vmem [resolvable:$true] %s241_s13 }
  0x13   : > { %s1004_s16 = scalar_lea.hbm %s1213_s11, 128  ;;  %p1006_p13 = pneg %p1217_p9 }
  0x14   : > { %p1005_p12 = scmp.ne.s32.totalorder %s1213_s11, %s1004_s16  ;;  %s1009_s24 = scalar_lea.hbm %s1431_s0, 256 }
  0x15   : > { %p1010_p2 = scmp.lt.u32.totalorder %s1213_s11, %s1431_s0  ;;  %p1011_p3 = scmp.lt.u32.totalorder %s1009_s24, %s1004_s16 }
  0x16   : > { %p1007_p0 = pnand %p1006_p13, %p1005_p12  ;;  %p1013_p5 = scmp.lt.u32.totalorder %s1004_s16, %s1213_s11 }
  0x17   : > { %p1012_p4 = por %p1011_p3, %p1010_p2 }
  0x18   : > { %p1008_p1 = pneg %p1007_p0 }
  0x19   : > { %p1014_p6 = por %p1013_p5, %p1012_p4 }
  0x1b   : > { %p1015_p8 = pnand %p1014_p6, %p1008_p1 }
  0x1d   : > { %1018 = shalt.err (!%p1015_p8)
}
  0x1e   : > { %s1019_s28 = scalar_lea.vmem %s1221_s13, 128  ;;  %s1120_s7 = smov [#allocation3]  }
  0x1f   : > { %p1020_p12 = scmp.ne.s32.totalorder %s1221_s13, %s1019_s28  ;;  %s1024_s8 = sshll.u32 %s1120_s7, 4  ;;  %s1025_s8 = int_to_ptr.vmem [resolvable:$false] %s1024_s8 }
  0x20   : > { %s1026_s9 = scalar_lea.vmem %s1025_s8, 256  ;;  %p1027_p11 = scmp.lt.s32.totalorder %s1221_s13, %s1025_s8 }
  0x21   : > { %p1022_p0 = pnand %p1020_p12, %p1006_p13  ;;  %p1028_p2 = scmp.lt.s32.totalorder %s1026_s9, %s1019_s28 }
  0x23   : > { %p1023_p10 = pneg %p1022_p0  ;;  %p1029_p3 = por %p1028_p2, %p1027_p11 }
  0x25   : > { %p1030_p4 = pnand %p1029_p3, %p1023_p10 }
  0x27   : > { %1033 = shalt.err (!%p1030_p4)
}
  0x28   : > { %948 = dma.hbm_to_vmem [thread:$0]  (!%p1217_p9), %s1213_s11, 128, %s1221_s13, %s228_s15  }
  0x29   : > { %p1441_p1 = scmp.lt.s32.totalorder %s1118_s23, 3  ;;  %p1442_p5 = scmp.ge.s32.totalorder %s1118_s23, 1 }
  0x2a   : > { %s797_s12 = sshll.u32 %s1114_s22, 4  ;;  %s260_s24 = scalar_lea.vmem [#allocation5], %s1206_s6 }
  0x2b   : > { %p1255_p6 = pnand %p1442_p5, %p1441_p1  ;;  %s1263_s18 = scalar_lea.hbm %s1433_s2, %s797_s12 }
  0x2c   : > { %s268_s26 = sshll.u32 %s260_s24, 4  ;;  %s258_s11 = scalar_lea.sflag [#allocation6], %s1206_s6  ;;  %s269_s26 = int_to_ptr.vmem [resolvable:$true] %s268_s26 }
  0x2d   : > { %s1443_s10 = scalar_select %p1255_p6, 1, 0 }
  0x2e   : > { %s1034_s13 = scalar_lea.hbm %s1263_s18, 16  ;;  %s1039_s28 = scalar_lea.hbm %s1433_s2, 32 }
  0x2f   : > { %p1035_p10 = scmp.ne.s32.totalorder %s1263_s18, %s1034_s13  ;;  %p1040_p12 = scmp.lt.u32.totalorder %s1263_s18, %s1433_s2 }
  0x30   : > { %p1041_p0 = scmp.lt.u32.totalorder %s1039_s28, %s1034_s13  ;;  %p1043_p3 = scmp.lt.u32.totalorder %s1034_s13, %s1263_s18 }
  0x31   : > { %p1037_p11 = pnand %p1035_p10, %p1006_p13 }
  0x32   : > { %p1042_p2 = por %p1041_p0, %p1040_p12 }
  0x33   : > { %p1038_p8 = pneg %p1037_p11 }
  0x34   : > { %p1044_p4 = por %p1043_p3, %p1042_p2 }
  0x36   : > { %p1045_p1 = pnand %p1044_p4, %p1038_p8 }
  0x38   : > { %1048 = shalt.err (!%p1045_p1)
}
  0x39   : > { %s1049_s6 = scalar_lea.vmem %s269_s26, 16  ;;  %s1121_s9 = smov [#allocation5]  }
  0x3a   : > { %p1050_p5 = scmp.ne.s32.totalorder %s269_s26, %s1049_s6  ;;  %s1054_s12 = sshll.u32 %s1121_s9, 4  ;;  %s1055_s12 = int_to_ptr.vmem [resolvable:$false] %s1054_s12 }
  0x3b   : > { %s1056_s16 = scalar_lea.vmem %s1055_s12, 32  ;;  %p1057_p7 = scmp.lt.s32.totalorder %s269_s26, %s1055_s12 }
  0x3c   : > { %p1052_p10 = pnand %p1050_p5, %p1006_p13  ;;  %p1058_p6 = scmp.lt.s32.totalorder %s1056_s16, %s1049_s6 }
  0x3e   : > { %p1053_p11 = pneg %p1052_p10  ;;  %p1059_p0 = por %p1058_p6, %p1057_p7 }
  0x40   : > { %p1060_p12 = pnand %p1059_p0, %p1053_p11 }
  0x42   : > { %1063 = shalt.err (!%p1060_p12)
}
  0x43   : > { %951 = dma.hbm_to_vmem [thread:$0]  (!%p1217_p9), %s1263_s18, 16, %s269_s26, %s258_s11  }
  0x44   : > { %p1444_p8 = scmp.ne.s32.totalorder %s1443_s10, 0 }
  0x45   : > { %s1289_s17 = sand.u32 (!%p1444_p8), 1, %s1102_s19   ;;  %p1445_p7 = scmp.ne.s32.totalorder (!%p1444_p8), %s1439_s29, 0 }
  0x46   : > { %287 = sbr.rel (%p1444_p8) target bundleno = 566 (0x236), region = 36  ;;  %s799_s24 = sshll.u32 (!%p1444_p8), %s1289_s17, 3 }
  0x47   : > { %s290_s13 = scalar_lea.sflag (!%p1444_p8), [#allocation4], %s1289_s17  ;;  %s1293_s15 = scalar_lea.vmem (!%p1444_p8), [#allocation3], %s799_s24 }
  0x4d   : > { %1089 = dma.done.wait (%p1445_p7), %s290_s13, 128  }
  0x4e   : > { %1091 = vsyncadd (%p1445_p7), %s290_s13, 4294967168  ;;  %s299_s14 = scalar_lea.sflag [#allocation6], %s1289_s17  ;;  %s301_s10 = scalar_lea.vmem [#allocation5], %s1289_s17 }
  0x4f   : > { %1093 = dma.done.wait (%p1445_p7), %s299_s14, 16  }
  0x50   : > { %1095 = vsyncadd (%p1445_p7), %s299_s14, 4294967280  ;;  %p349_p9 = scmp.lt.s32.totalorder %s1110_s21, 1  ;;  %v382_v0 = vlaneseq  ;;  %v1122_v14 = vmov 1.0|1.0   ;;  %v377_v21 = vld [vmem:[%s1293_s15] sm:$0xff]  ;;  %v1123_v37 = vmov 0.0  }
  0x51   : > { %v517_v26 = vcombine.high %v377_v21, %v377_v21  ;;  %376 = vst [vmem:[#allocation2] sm:$0xf] %v1123_v37  ;;  %v594_v44 = vld [vmem:[%s301_s10] sm:$0x1] }
  0x52   : > { %s1454_s21 = smov (!%p349_p9, %s1110_s21), 1  ;;  %v1309_v1 = vshrl.u32 %v382_v0, 7 }
  0x53   : > { %s354_s11 = scalar_lea.vmem %s1432_s1, %s1454_s21  ;;  %583 = vmatprep.mubr.f32.mxu0 %v517_v26  ;;  %s800_s29 = sshll.u32 %s1454_s21, 2 }
  0x54   : > { %v399_v2 = vadd.s32 128, %v1309_v1  ;;  %v400_v3 = vadd.s32 136, %v1309_v1  ;;  %v384_v4 = vadd.s32 8, %v1309_v1  ;;  %v401_v5 = vadd.s32 144, %v1309_v1  ;;  %v1324_v11 = vld [vmem:[%s354_s11] ss:$0 sm:$0xff]  ;;  %s361_s7 = scalar_lea.vmem %s1434_s3, %s800_s29  ;;  %s365_s9 = scalar_lea.vmem %s1435_s4, %s1454_s21 }
  0x55   : > { %v402_v6 = vadd.s32 152, %v1309_v1  ;;  %v385_v7 = vadd.s32 16, %v1309_v1  ;;  %v386_v8 = vadd.s32 24, %v1309_v1  ;;  %v403_v9 = vadd.s32 160, %v1309_v1  ;;  %v596_v45 = vld [vmem:[%s361_s7] sm:$0xf]  ;;  %s370_s24 = scalar_lea.vmem %s1436_s5, %s1454_s21 }
  0x56   : > { %v404_v10 = vadd.s32 168, %v1309_v1  ;;  %v387_v12 = vadd.s32 32, %v1309_v1  ;;  %v388_v13 = vadd.s32 40, %v1309_v1  ;;  %vm435_vm0 = vcmp.eq.s32.totalorder %v399_v2, %v1324_v11 }
  0x57   : > { %vm436_vm1 = vcmp.eq.s32.totalorder %v400_v3, %v1324_v11  ;;  %vm419_vm2 = vcmp.eq.s32.totalorder %v1309_v1, %v1324_v11  ;;  %vm420_vm3 = vcmp.eq.s32.totalorder %v384_v4, %v1324_v11  ;;  %vm437_vm5 = vcmp.eq.s32.totalorder %v401_v5, %v1324_v11 }
  0x58   : > { %vm905_vm4 = vmpackc.low %vm436_vm1, %vm435_vm0  ;;  %vm438_vm6 = vcmp.eq.s32.totalorder %v402_v6, %v1324_v11  ;;  %vm421_vm7 = vcmp.eq.s32.totalorder %v385_v7, %v1324_v11  ;;  %vm422_vm8 = vcmp.eq.s32.totalorder %v386_v8, %v1324_v11  ;;  %vm439_vm10 = vcmp.eq.s32.totalorder %v403_v9, %v1324_v11  ;;  %v515_v39 = vld [vmem:[#allocation2] sm:$0xf] }
  0x59   : > { %906 = vmatprep.subr.msk.bf16.mxu0 %vm905_vm4, %v1122_v14  ;;  %vm907_vm9 = vmpackc.low %vm420_vm3, %vm419_vm2  ;;  %vm440_vm11 = vcmp.eq.s32.totalorder %v404_v10, %v1324_v11  ;;  %v405_v15 = vadd.s32 176, %v1309_v1  ;;  %v406_v16 = vadd.s32 184, %v1309_v1  ;;  %v389_v17 = vadd.s32 48, %v1309_v1 }
  0x5a   : > { %908 = vmatpush3.bf16.msk.msra.mxu0 %vm907_vm9, %v1122_v14  ;;  %vm909_vm12 = vmpackc.low %vm438_vm6, %vm437_vm5  ;;  %vm423_vm15 = vcmp.eq.s32.totalorder %v387_v12, %v1324_v11  ;;  %vm424_vm0 = vcmp.eq.s32.totalorder %v388_v13, %v1324_v11  ;;  %v390_v18 = vadd.s32 56, %v1309_v1  ;;  %v407_v19 = vadd.s32 192, %v1309_v1 }
  0x5b   : > { %910 = vmatprep.subr.msk.bf16.mxu0 %vm909_vm12, %v1122_v14  ;;  %vm911_vm13 = vmpackc.low %vm422_vm8, %vm421_vm7  ;;  %vm441_vm1 = vcmp.eq.s32.totalorder %v405_v15, %v1324_v11  ;;  %vm442_vm2 = vcmp.eq.s32.totalorder %v406_v16, %v1324_v11  ;;  %v408_v20 = vadd.s32 200, %v1309_v1  ;;  %vm425_vm4 = vcmp.eq.s32.totalorder %v389_v17, %v1324_v11 }
  0x5c   : > { %vm913_vm14 = vmpackc.low %vm440_vm11, %vm439_vm10  ;;  %vm426_vm6 = vcmp.eq.s32.totalorder %v390_v18, %v1324_v11  ;;  %vm443_vm7 = vcmp.eq.s32.totalorder %v407_v19, %v1324_v11  ;;  %v391_v22 = vadd.s32 64, %v1309_v1  ;;  %v392_v23 = vadd.s32 72, %v1309_v1 }
  0x5d   : > { %vm915_vm3 = vmpackc.low %vm424_vm0, %vm423_vm15  ;;  %vm444_vm8 = vcmp.eq.s32.totalorder %v408_v20, %v1324_v11  ;;  %v409_v24 = vadd.s32 208, %v1309_v1  ;;  %v410_v25 = vadd.s32 216, %v1309_v1  ;;  %v393_v27 = vadd.s32 80, %v1309_v1 }
  0x5e   : > { %912 = vmatpush3.bf16.msk.msra.mxu0 %vm911_vm13, %v1122_v14  ;;  %vm917_vm5 = vmpackc.low %vm442_vm2, %vm441_vm1  ;;  %vm427_vm11 = vcmp.eq.s32.totalorder %v391_v22, %v1324_v11  ;;  %vm428_vm12 = vcmp.eq.s32.totalorder %v392_v23, %v1324_v11  ;;  %v394_v28 = vadd.s32 88, %v1309_v1  ;;  %v411_v29 = vadd.s32 224, %v1309_v1 }
  0x5f   : > { %914 = vmatprep.subr.msk.bf16.mxu0 %vm913_vm14, %v1122_v14  ;;  %vm919_vm9 = vmpackc.low %vm426_vm6, %vm425_vm4  ;;  %vm445_vm13 = vcmp.eq.s32.totalorder %v409_v24, %v1324_v11  ;;  %vm446_vm14 = vcmp.eq.s32.totalorder %v410_v25, %v1324_v11  ;;  %v412_v30 = vadd.s32 232, %v1309_v1  ;;  %vm429_vm1 = vcmp.eq.s32.totalorder %v393_v27, %v1324_v11 }
  0x60   : > { %vm921_vm10 = vmpackc.low %vm444_vm8, %vm443_vm7  ;;  %vm430_vm2 = vcmp.eq.s32.totalorder %v394_v28, %v1324_v11  ;;  %v395_v31 = vadd.s32 96, %v1309_v1  ;;  %v396_v32 = vadd.s32 104, %v1309_v1  ;;  %v413_v33 = vadd.s32 240, %v1309_v1 }
  0x61   : > { %vm923_vm15 = vmpackc.low %vm428_vm12, %vm427_vm11  ;;  %vm448_vm4 = vcmp.eq.s32.totalorder %v412_v30, %v1324_v11  ;;  %v414_v34 = vadd.s32 248, %v1309_v1  ;;  %v397_v35 = vadd.s32 112, %v1309_v1  ;;  %v398_v36 = vadd.s32 120, %v1309_v1 }
  0x62   : > { %916 = vmatpush3.bf16.msk.msra.mxu0 %vm915_vm3, %v1122_v14  ;;  %vm925_vm0 = vmpackc.low %vm446_vm14, %vm445_vm13  ;;  %vm447_vm3 = vcmp.eq.s32.totalorder %v411_v29, %v1324_v11  ;;  %vm431_vm7 = vcmp.eq.s32.totalorder %v395_v31, %v1324_v11  ;;  %vm432_vm8 = vcmp.eq.s32.totalorder %v396_v32, %v1324_v11  ;;  %v601_v43 = vsub.s32 0, %v1309_v1 }
  0x63   : > { %918 = vmatprep.subr.msk.bf16.mxu0 %vm917_vm5, %v1122_v14  ;;  %vm927_vm5 = vmpackc.low %vm430_vm2, %vm429_vm1  ;;  %vm433_vm13 = vcmp.eq.s32.totalorder %v397_v35, %v1324_v11  ;;  %vm434_vm14 = vcmp.eq.s32.totalorder %v398_v36, %v1324_v11  ;;  %vm611_vm1 = vcmask 1043456   ;;  %vm625_vm2 = vcmask 1040384  }
  0x64   : > { %vm929_vm6 = vmpackc.low %vm448_vm4, %vm447_vm3  ;;  %v602_v46 = vrot.slane %v594_v44, %v601_v43  ;;  %v626_v56 = vsel %vm625_vm2, %v594_v44, 0.0  ;;  %vm623_vm3 = vcmask 0  }
  0x65   : > { %vm931_vm11 = vmpackc.low %vm432_vm8, %vm431_vm7 }
  0x66   : > { %920 = vmatpush3.bf16.msk.msra.mxu0 %vm919_vm9, %v1122_v14  ;;  %vm449_vm9 = vcmp.eq.s32.totalorder %v413_v33, %v1324_v11 }
  0x67   : > { %922 = vmatprep.subr.msk.bf16.mxu0 %vm921_vm10, %v1122_v14  ;;  %vm450_vm10 = vcmp.eq.s32.totalorder %v414_v34, %v1324_v11 }
  0x68   : > { %vm933_vm12 = vmpackc.low %vm450_vm10, %vm449_vm9 }
  0x6a   : > { %924 = vmatpush3.bf16.msk.msra.mxu0 %vm923_vm15, %v1122_v14  ;;  %vm935_vm15 = vmpackc.low %vm434_vm14, %vm433_vm13 }
  0x6b   : > { %926 = vmatprep.subr.msk.bf16.mxu0 %vm925_vm0, %v1122_v14 }
  0x6e   : > { %928 = vmatpush3.bf16.msk.msra.mxu0 %vm927_vm5, %v1122_v14 }
  0x6f   : > { %930 = vmatprep.subr.msk.bf16.mxu0 %vm929_vm6, %v1122_v14 }
  0x72   : > { %932 = vmatpush3.bf16.msk.msra.mxu0 %vm931_vm11, %v1122_v14 }
  0x73   : > { %934 = vmatprep.subr.msk.bf16.mxu0 %vm933_vm12, %v1122_v14 }
  0x76   : > { %936 = vmatpush3.bf16.msk.msra.mxu0 %vm935_vm15, %v1122_v14 }
  0x79   : > { %584 = vmatmul.mubr.f32.vlgmr.msra.gmra.mrb[0].mxu0 %v377_v21 }
 0x14c   : > { %v902_v38 = vpop.f32.mrb[0].mxu0 }
 0x14d   : > { %v903_v40 = vpop.f32.mrb[1].mxu0 }
 0x14e   : > { %v904_v41 = vadd.f32 %v903_v40, %v902_v38 }
 0x150   : > { %v589_v42 = vadd.f32 %v904_v41, %v515_v39 }
 0x152   : > { %590 = vst [vmem:[#allocation2] sm:$0xf] %v589_v42 }
 0x159   : > { %v595_v47 = vld [vmem:[#allocation2] sm:$0xf] }
 0x15a   : > { %v597_v48 = vsub.f32 %v595_v47, %v596_v45 }
 0x15c   : > { %v604_v49 = vmul.f32 %v602_v46, %v597_v48 }
 0x15e   : > { %v605_v50 = vand.u32 2147483647, %v604_v49  ;;  %v607_v51 = vmul.f32 0.5, %v604_v49 }
 0x160   : > { %vm606_vm0 = vcmp.lt.f32.partialorder %v605_v50, 1.0  ;;  %v608_v52 = vmul.f32 %v607_v51, %v604_v49  ;;  %v866_v53 = vadd.f32 -0.5, %v605_v50 }
 0x162   : > { %v610_v54 = vsel %vm606_vm0, %v608_v52, %v866_v53 }
 0x163   : > { %v612_v55 = vsel %vm611_vm1, %v610_v54, 0.0 }
 0x164   : > { %613 = vadd.xlane.f32.xlu0 %v612_v55 }
 0x168   : > { %627 = vadd.xlane.f32.xlu0 %v626_v56 }
 0x1f1   : > { %v614_v57 = vpop.xlane.xlu0 %613 }
 0x1f2   : > { %v615_v58 = vrot.slane %v614_v57, 4 }
 0x1f4   : > { %v616_v59 = vadd.f32 %v615_v58, %v614_v57 }
 0x1f5   : > { %v628_v60 = vpop.xlane.xlu0 %627 }
 0x1f6   : > { %v617_v61 = vrot.slane %v616_v59, 2  ;;  %v629_v62 = vrot.slane %v628_v60, 4 }
 0x1f8   : > { %v630_v63 = vadd.f32 %v629_v62, %v628_v60  ;;  %v618_v0 = vadd.f32 %v617_v61, %v616_v59 }
 0x1fa   : > { %v631_v1 = vrot.slane %v630_v63, 2  ;;  %v619_v2 = vrot.slane %v618_v0, 1 }
 0x1fc   : > { %v632_v3 = vadd.f32 %v631_v1, %v630_v63  ;;  %v620_v4 = vadd.f32 %v619_v2, %v618_v0 }
 0x1fe   : > { %937 = vpush %v620_v4  ;;  %v633_v5 = vrot.slane %v632_v3, 1 }
 0x200   : > { %v634_v6 = vadd.f32 %v633_v5, %v632_v3 }
 0x202   : > { %939 = vpush %v634_v6 }
 0x22f   : > { %s938_s12 = spop %937 }
 0x230   : > { %v622_v7 = vstv %s938_s12 }
 0x231   : > { %624 = vst.msk [vmem:[%s365_s9] sm:$0x1] %vm623_vm3, %v622_v7 }
 0x233   : > { %s940_s13 = spop %939 }
 0x234   : > { %v636_v8 = vstv %s940_s13 }
 0x235   : > { %637 = vst.msk [vmem:[%s370_s24] sm:$0x1] %vm623_vm3, %v636_v8 }
 0x236 PF: > { %s22_s23 = sadd.s32 1, %s1118_s23   ;;  %s1446_s18 = smov %s1102_s19 }
 0x237   : > { %p19_p13 = scmp.ge.s32.totalorder %s22_s23, 4   ;;  %s1447_s19 = smov %s1106_s20 }
 0x238   : > { %s1448_s20 = smov %s1203_s30  ;;  %s1449_s21 = smov %s1114_s22 }
 0x239   : > { %s1450_s22 = smov %s1452_s25  ;;  %21 = sbr.rel (!%p19_p13) target bundleno = 6 (0x6), region = 115 }
 0x240   :  { %673 = vsyncpa [#allocation4], 1 }
 0x241   :  { %675 = vsyncpa [#allocation4 + $0x1], 1 }
 0x242   :  { %676 = vsyncpa [#allocation6], 1 }
 0x243   :  { %678 = vsyncpa [#allocation6 + $0x1], 1 }

</bundles_post_ra>
